<compile_context>
chip_gen: v6e
topology: v6e:2x2x1
jax: 0.10.0
libtpu: 0.0.40
codegen_flags: <defaults>
</compile_context>

<pallas_src>
import jax
import jax.numpy as jnp
from jax.experimental import pallas as pl
from jax.experimental.pallas import tpu as pltpu

MATMUL_DTYPE = jnp.bfloat16     # MXU operand dtype (f32 accumulation)
ACT_DTYPE = jnp.bfloat16        # inter-layer activation storage dtype in HBM
BN_EPS = 1e-5
DIST_EPS = 1e-8
LANE = 128
VMEM_LIMIT_BYTES = 32 * 1024 * 1024


def _round_up(x, m):
    return ((x + m - 1) // m) * m


def _pick_tile(n_pad, cap, s=None):
    """Largest lane tile <= cap dividing n_pad; optionally bound the ~4 live
    f32 [S, TN] intermediates of the fused-interp kernel to ~8 MiB."""
    for t in (2048, 1024, 512, 256, 128):
        if t > cap or n_pad % t:
            continue
        if s is not None and s * t * 16 > (8 << 20):
            continue
        return t
    return LANE


def _split_grid(b, num_tiles):
    """Flattened (b*outer, inner) grid: guarantees a parallel grid extent >= 2
    when B == 1 so both v7x TensorCores get work."""
    n_outer = 2 if (b == 1 and num_tiles % 2 == 0) else 1
    return n_outer, num_tiles // n_outer


def _xmaps(n_outer, n_inner):
    """(tiled-over-N, resident-per-batch) index maps for the flattened grid."""
    if n_outer == 1:
        return (lambda bo, ni: (bo, 0, ni)), (lambda bo, ni: (bo, 0, 0))
    tile = lambda bo, ni: (bo // n_outer, 0, (bo % n_outer) * n_inner + ni)
    res = lambda bo, ni: (bo // n_outer, 0, 0)
    return tile, res


def _mask_cols(z, n_real, tn, n_outer, n_inner):
    """Zero columns that belong to N-padding (keeps BN statistics exact)."""
    if n_outer == 1:
        nt = pl.program_id(1)
    else:
        nt = (pl.program_id(0) % n_outer) * n_inner + pl.program_id(1)
    col = nt * tn + jax.lax.broadcasted_iota(jnp.int32, (1, tn), 1)
    return jnp.where(col < n_real, z, 0.0)


def _accum_stats(z, s_ref, ss_ref):
    """Accumulate per-channel sum / sum-of-squares across the N-tile axis."""
    @pl.when(pl.program_id(1) == 0)
    def _():
        s_ref[0] = jnp.zeros(s_ref.shape[1:], s_ref.dtype)
        ss_ref[0] = jnp.zeros(ss_ref.shape[1:], ss_ref.dtype)
    s_ref[0] = s_ref[0] + jnp.sum(z, axis=1, keepdims=True)      # [Cout, 1]
    ss_ref[0] = ss_ref[0] + jnp.sum(z * z, axis=1, keepdims=True)


def _interp_weights(x1, x2):
    """Normalized 3-NN inverse-distance weights.

    x1: [3, TN] f32 (dense points, channels on sublanes, points on lanes)
    x2: [S, 3]  f32 (sampled points)
    returns [S, TN] f32 with (up to) 3 non-zeros per column, summing to 1.
    """
    S, TN = x2.shape[0], x1.shape[1]

    # Pairwise squared distances on the VPU (channel-unrolled difference form;
    # a K=3 matmul would waste 125/128 of the MXU contraction depth).
    d = jnp.zeros((S, TN), jnp.float32)
    for c in range(x1.shape[0]):
        diff = x2[:, c:c + 1] - x1[c:c + 1, :]           # [S,1]-[1,TN] -> [S,TN]
        d = d + diff * diff
    d = d + DIST_EPS                                      # matches 1/(d + 1e-8)

    # Pack (distance, source index) into one f32-ordered key: d > 0 so its bit
    # pattern is monotone as int32; the low ceil(log2(S)) mantissa bits carry
    # the row index.  One XLU min per pick, distinct picks guaranteed,
    # first-index tie-break (distances quantized by <= 2^(kbits-23) relative).
    kbits = max(1, (S - 1).bit_length())
    lowmask = jnp.int32(~((1 << kbits) - 1))
    iota_s = jax.lax.broadcasted_iota(jnp.int32, (S, TN), 0)
    key = pltpu.bitcast((pltpu.bitcast(d, jnp.int32) & lowmask) | iota_s,
                        jnp.float32)

    wmat = jnp.zeros((S, TN), jnp.float32)
    norm = jnp.zeros((1, TN), jnp.float32)
    # S < 3 degrades gracefully to S-NN, which matches the reference behaviour
    # (S==1 repeat / S==2 two-neighbour interpolation).
    for _ in range(min(3, S)):
        kmin = jnp.min(key, axis=0, keepdims=True)               # [1, TN] (XLU)
        onehot = key == kmin                                     # one hit / col
        # Recover the (quantized) min distance; EXACT reciprocal of just this
        # [1, TN] row (3*TN divides total instead of S*TN).
        dmin = pltpu.bitcast(pltpu.bitcast(kmin, jnp.int32) & lowmask,
                             jnp.float32)
        w_row = 1.0 / dmin
        wmat = wmat + jnp.where(onehot, w_row, 0.0)
        norm = norm + w_row
        key = jnp.where(onehot, jnp.inf, key)

    return wmat * (1.0 / norm)                                   # rows sum to 1


# ---------------------------------------------------------------------------
# Kernel 1: fused 3-NN interpolation + Conv1d[0] (channel concat folded into
# two matmuls) + BN-stat accumulation, per (batch, N-tile).
# ---------------------------------------------------------------------------
def _make_l0_kernel(has_p1, n_mask, tn, n_outer, n_inner):
    def kernel(*refs):
        if has_p1:
            (x1_ref, x2_ref, p2_ref, p1_ref, wb_ref, wa_ref,
             z_ref, s_ref, ss_ref) = refs
        else:
            x1_ref, x2_ref, p2_ref, wb_ref, z_ref, s_ref, ss_ref = refs

        wnorm = _interp_weights(x1_ref[0].astype(jnp.float32),
                                x2_ref[0].astype(jnp.float32))       # [S, TN]
        interp = jnp.dot(p2_ref[0].astype(MATMUL_DTYPE),
                         wnorm.astype(MATMUL_DTYPE),
                         preferred_element_type=jnp.float32)         # [D2, TN]
        z = jnp.dot(wb_ref[...], interp.astype(MATMUL_DTYPE),
                    preferred_element_type=jnp.float32)              # [Cout, TN]
        if has_p1:
            z = z + jnp.dot(wa_ref[...], p1_ref[0].astype(MATMUL_DTYPE),
                            preferred_element_type=jnp.float32)
        if n_mask is not None:
            z = _mask_cols(z, n_mask, tn, n_outer, n_inner)
        z_ref[0] = z.astype(z_ref.dtype)
        _accum_stats(z, s_ref, ss_ref)
    return kernel


def l0_fused_pallas(xyz1, xyz2_t, points2, points1, wb, wa, n_real):
    """xyz1 [B,3,Np], xyz2_t [B,S,3], points2 [B,D2,S], points1 [B,D1,Np]|None,
    wb [Cout,D2], wa [Cout,D1]|None -> (z [B,Cout,Np] bf16, sum, ssq)."""
    B, C, Np = xyz1.shape
    S = xyz2_t.shape[1]
    D2 = points2.shape[1]
    Cout = wb.shape[0]
    TN = _pick_tile(Np, cap=512, s=S)
    NO, NI = _split_grid(B, Np // TN)
    tile_map, res_map = _xmaps(NO, NI)
    wmap = lambda bo, ni: (0, 0)
    smap = lambda bo, ni: (bo, 0, 0)
    n_mask = n_real if n_real != Np else None
    kernel = _make_l0_kernel(points1 is not None, n_mask, TN, NO, NI)

    in_specs = [pl.BlockSpec((1, C, TN), tile_map),
                pl.BlockSpec((1, S, C), res_map),        # resident per batch
                pl.BlockSpec((1, D2, S), res_map)]       # resident per batch
    args = [xyz1, xyz2_t, points2]
    if points1 is not None:
        D1 = points1.shape[1]
        in_specs.append(pl.BlockSpec((1, D1, TN), tile_map))
        args.append(points1)
    in_specs.append(pl.BlockSpec((Cout, D2), wmap))
    args.append(wb)
    if points1 is not None:
        in_specs.append(pl.BlockSpec((Cout, wa.shape[1]), wmap))
        args.append(wa)

    return pl.pallas_call(
        kernel,
        out_shape=(jax.ShapeDtypeStruct((B, Cout, Np), ACT_DTYPE),
                   jax.ShapeDtypeStruct((B * NO, Cout, 1), jnp.float32),
                   jax.ShapeDtypeStruct((B * NO, Cout, 1), jnp.float32)),
        grid=(B * NO, NI),
        in_specs=in_specs,
        out_specs=(pl.BlockSpec((1, Cout, TN), tile_map),
                   pl.BlockSpec((1, Cout, 1), smap),
                   pl.BlockSpec((1, Cout, 1), smap)),
        compiler_params=pltpu.CompilerParams(
            dimension_semantics=("parallel", "arbitrary"),
            vmem_limit_bytes=VMEM_LIMIT_BYTES),
    )(*args)


# ---------------------------------------------------------------------------
# Kernel 2: previous layer's BN apply + ReLU fused into this layer's Conv1d
# matmul (+ BN-stat accumulation for this layer).
# ---------------------------------------------------------------------------
def _make_bn_mm_kernel(n_mask, tn, n_outer, n_inner):
    def kernel(z_ref, sc_ref, sh_ref, w_ref, zo_ref, s_ref, ss_ref):
        a = jnp.maximum(
            z_ref[0].astype(jnp.float32) * sc_ref[...] + sh_ref[...], 0.0)
        z = jnp.dot(w_ref[...], a.astype(w_ref.dtype),
                    preferred_element_type=jnp.float32)              # [Cout, TN]
        if n_mask is not None:
            z = _mask_cols(z, n_mask, tn, n_outer, n_inner)
        zo_ref[0] = z.astype(zo_ref.dtype)
        _accum_stats(z, s_ref, ss_ref)
    return kernel


def bn_relu_mm_stats_pallas(z, scale, shift, w, n_real):
    B, Cin, Np = z.shape
    Cout = w.shape[0]
    TN = _pick_tile(Np, cap=1024)
    NO, NI = _split_grid(B, Np // TN)
    tile_map, _ = _xmaps(NO, NI)
    cmap = lambda bo, ni: (0, 0)
    smap = lambda bo, ni: (bo, 0, 0)
    n_mask = n_real if n_real != Np else None
    kernel = _make_bn_mm_kernel(n_mask, TN, NO, NI)
    return pl.pallas_call(
        kernel,
        out_shape=(jax.ShapeDtypeStruct((B, Cout, Np), ACT_DTYPE),
                   jax.ShapeDtypeStruct((B * NO, Cout, 1), jnp.float32),
                   jax.ShapeDtypeStruct((B * NO, Cout, 1), jnp.float32)),
        grid=(B * NO, NI),
        in_specs=[pl.BlockSpec((1, Cin, TN), tile_map),
                  pl.BlockSpec((Cin, 1), cmap),
                  pl.BlockSpec((Cin, 1), cmap),
                  pl.BlockSpec((Cout, Cin), cmap)],
        out_specs=(pl.BlockSpec((1, Cout, TN), tile_map),
                   pl.BlockSpec((1, Cout, 1), smap),
                   pl.BlockSpec((1, Cout, 1), smap)),
        compiler_params=pltpu.CompilerParams(
            dimension_semantics=("parallel", "arbitrary"),
            vmem_limit_bytes=VMEM_LIMIT_BYTES),
    )(z, scale, shift, w)


# ---------------------------------------------------------------------------
# Kernel 3: final BN apply + ReLU (f32 output, lane-dense over N).
# ---------------------------------------------------------------------------
def _bn_relu_kernel(z_ref, sc_ref, sh_ref, o_ref):
    o_ref[0] = jnp.maximum(
        z_ref[0].astype(jnp.float32) * sc_ref[...] + sh_ref[...],
        0.0).astype(o_ref.dtype)


def bn_relu_pallas(z, scale, shift):
    B, C, Np = z.shape
    TN = _pick_tile(Np, cap=1024)
    NO, NI = _split_grid(B, Np // TN)
    tile_map, _ = _xmaps(NO, NI)
    cmap = lambda bo, ni: (0, 0)
    return pl.pallas_call(
        _bn_relu_kernel,
        out_shape=jax.ShapeDtypeStruct((B, C, Np), jnp.float32),
        grid=(B * NO, NI),
        in_specs=[pl.BlockSpec((1, C, TN), tile_map),
                  pl.BlockSpec((C, 1), cmap),
                  pl.BlockSpec((C, 1), cmap)],
        out_specs=pl.BlockSpec((1, C, TN), tile_map),
        compiler_params=pltpu.CompilerParams(
            dimension_semantics=("parallel", "parallel"),
            vmem_limit_bytes=VMEM_LIMIT_BYTES),
    )(z, scale, shift)


def _bn_scale_shift(st_sum, st_ssq, gamma, beta, count):
    """Per-channel training-mode BN scale/shift from accumulated sums."""
    s = jnp.sum(st_sum, axis=(0, 2))                       # [C]
    ss = jnp.sum(st_ssq, axis=(0, 2))                      # [C]
    mean = s / count
    var = jnp.maximum(ss / count - mean * mean, 0.0)       # biased, clamped
    scale = gamma * jax.lax.rsqrt(var + BN_EPS)
    shift = beta - mean * scale
    return scale.reshape(-1, 1), shift.reshape(-1, 1)


# ---------------------------------------------------------------------------
# Full forward.
# ---------------------------------------------------------------------------
def pointnet_fp_forward(xyz1, xyz2, points1, points2, params):
    """
    xyz1:    [B, 3, N]   positions of the dense point set
    xyz2:    [B, 3, S]   positions of the sampled point set
    points1: [B, D1, N]  or None
    points2: [B, D2, S]
    params:  list of (w[Cin, Cout], gamma[Cout], beta[Cout]) per MLP layer.
             (Conv1d bias omitted: cancelled exactly by training-mode BN.)
    returns: [B, mlp[-1], N] float32
    """
    B, _, N = xyz1.shape
    Np = max(LANE, _round_up(N, LANE))
    if Np != N:
        pad = ((0, 0), (0, 0), (0, Np - N))
        xyz1 = jnp.pad(xyz1, pad)
        points1 = jnp.pad(points1, pad) if points1 is not None else None

    xyz2_t = jnp.transpose(xyz2, (0, 2, 1))                # tiny [B, S, 3]
    points2 = points2.astype(MATMUL_DTYPE)                  # only an MXU operand
    count = float(B * N)

    # Layer 0: interpolation + channel concat fused into the first conv.
    w0, g0, b0 = params[0]
    wt0 = w0.T.astype(MATMUL_DTYPE)                          # [Cout, Cin]
    if points1 is not None:
        D1 = points1.shape[1]
        wa, wb = wt0[:, :D1], wt0[:, D1:]
    else:
        wa, wb = None, wt0
    z, ssum, ssq = l0_fused_pallas(xyz1, xyz2_t, points2, points1, wb, wa, N)
    scale, shift = _bn_scale_shift(ssum, ssq, g0, b0, count)

    # Layers 1..L-1: previous layer's BN+ReLU fused with this layer's matmul.
    for (w, g, b) in params[1:]:
        z, ssum, ssq = bn_relu_mm_stats_pallas(
            z, scale, shift, w.T.astype(MATMUL_DTYPE), N)
        scale, shift = _bn_scale_shift(ssum, ssq, g, b, count)

    # Final BN + ReLU; output is lane-dense [B, D', N] f32 (no transpose).
    out = bn_relu_pallas(z, scale, shift)
    return out[:, :, :N] if Np != N else out


# ---------------------------------------------------------------------------
if __name__ == "__main__":
    key = jax.random.PRNGKey(0)

    # --- run 1: B=2, ragged N (exercises N-padding + stat masking) ----------
    B, C, N, S = 2, 3, 16, 8
    D1, D2 = 8, 16
    mlp = [32, 16]
    in_channel = D1 + D2

    keys = jax.random.split(key, 12)
    xyz1 = jax.random.normal(keys[0], (B, C, N), jnp.float32)
    xyz2 = jax.random.normal(keys[1], (B, C, S), jnp.float32)
    points1 = jax.random.normal(keys[2], (B, D1, N), jnp.float32)
    points2 = jax.random.normal(keys[3], (B, D2, S), jnp.float32)

    params = []
    last = in_channel
    kidx = 4
    for outc in mlp:
        w = 0.1 * jax.random.normal(keys[kidx], (last, outc), jnp.float32)
        kidx += 1
        params.append((w, jnp.ones((outc,), jnp.float32),
                       jnp.zeros((outc,), jnp.float32)))
        last = outc

    out = pointnet_fp_forward(xyz1, xyz2, points1, points2, params)
    out = jax.block_until_ready(out)
    assert out.shape == (B, mlp[-1], N), out.shape
    assert bool(jnp.all(jnp.isfinite(out)))

    # --- run 2: B=1, points1=None, aligned N (exercises megacore split) -----
    B2, N2, S2, D2b = 1, 2048, 4, 8
    mlp2 = [16, 8]
    xyz1b = jax.random.normal(keys[6], (B2, C, N2), jnp.float32)
    xyz2b = jax.random.normal(keys[7], (B2, C, S2), jnp.float32)
    points2b = jax.random.normal(keys[8], (B2, D2b, S2), jnp.float32)

    params2 = []
    last = D2b
    kidx = 9
    for outc in mlp2:
        w = 0.1 * jax.random.normal(keys[kidx], (last, outc), jnp.float32)
        kidx += 1
        params2.append((w, jnp.ones((outc,), jnp.float32),
                        jnp.zeros((outc,), jnp.float32)))
        last = outc

    out2 = pointnet_fp_forward(xyz1b, xyz2b, None, points2b, params2)
    out2 = jax.block_until_ready(out2)
    assert out2.shape == (B2, mlp2[-1], N2), out2.shape
    assert bool(jnp.all(jnp.isfinite(out2)))

    print("KERNEL_OK")
</pallas_src>

<mosaic_0001>
module attributes {stable_mosaic.version = 11 : i64} {
  func.func @kernel(%arg0: i32, %arg1: i32, %arg2: memref<1x3x128xf32, #tpu.memory_space<vmem>>, %arg3: memref<1x8x3xf32, #tpu.memory_space<vmem>>, %arg4: memref<1x16x8xbf16, #tpu.memory_space<vmem>>, %arg5: memref<1x8x128xf32, #tpu.memory_space<vmem>>, %arg6: memref<32x16xbf16, #tpu.memory_space<vmem>>, %arg7: memref<32x8xbf16, #tpu.memory_space<vmem>>, %arg8: memref<1x32x128xbf16, #tpu.memory_space<vmem>>, %arg9: memref<1x32x1xf32, #tpu.memory_space<vmem>>, %arg10: memref<1x32x1xf32, #tpu.memory_space<vmem>>) attributes {dimension_semantics = [#tpu.dimension_semantics<parallel>, #tpu.dimension_semantics<arbitrary>], iteration_bounds = array<i64: 2, 1>, scalar_prefetch = 0 : i64, scratch_operands = 0 : i64, tpu.core_type = #tpu.core_type<tc>, window_params = [{transform_indices = @transform_0, window_bounds = array<i64: 1, 3, 128>}, {transform_indices = @transform_1, window_bounds = array<i64: 1, 8, 3>}, {transform_indices = @transform_2, window_bounds = array<i64: 1, 16, 8>}, {transform_indices = @transform_3, window_bounds = array<i64: 1, 8, 128>}, {pipeline_mode = #tpu.pipeline_mode<synchronous>, transform_indices = @transform_4, window_bounds = array<i64: 32, 16>}, {pipeline_mode = #tpu.pipeline_mode<synchronous>, transform_indices = @transform_5, window_bounds = array<i64: 32, 8>}, {transform_indices = @transform_6, window_bounds = array<i64: 1, 32, 128>}, {transform_indices = @transform_7, window_bounds = array<i64: 1, 32, 1>}, {transform_indices = @transform_8, window_bounds = array<i64: 1, 32, 1>}]} {
    %c0 = arith.constant 0 : index
    %c0_0 = arith.constant 0 : index
    %c0_1 = arith.constant 0 : index
    %0 = vector.load %arg2[%c0, %c0_0, %c0_1] : memref<1x3x128xf32, #tpu.memory_space<vmem>>, vector<1x3x128xf32>
    %1 = vector.shape_cast %0 : vector<1x3x128xf32> to vector<3x128xf32>
    %c0_2 = arith.constant 0 : index
    %c0_3 = arith.constant 0 : index
    %c0_4 = arith.constant 0 : index
    %2 = vector.load %arg3[%c0_2, %c0_3, %c0_4] : memref<1x8x3xf32, #tpu.memory_space<vmem>>, vector<1x8x3xf32>
    %3 = vector.shape_cast %2 : vector<1x8x3xf32> to vector<8x3xf32>
    %cst = arith.constant 0.000000e+00 : f32
    %4 = vector.broadcast %cst : f32 to vector<8x128xf32>
    %5 = vector.extract_strided_slice %3 {offsets = [0, 0], sizes = [8, 1], strides = [1, 1]} : vector<8x3xf32> to vector<8x1xf32>
    %6 = vector.extract_strided_slice %1 {offsets = [0, 0], sizes = [1, 128], strides = [1, 1]} : vector<3x128xf32> to vector<1x128xf32>
    %7 = vector.broadcast %5 : vector<8x1xf32> to vector<8x128xf32>
    %8 = vector.broadcast %6 : vector<1x128xf32> to vector<8x128xf32>
    %9 = arith.subf %7, %8 : vector<8x128xf32>
    %10 = arith.mulf %9, %9 : vector<8x128xf32>
    %11 = arith.addf %4, %10 : vector<8x128xf32>
    %12 = vector.extract_strided_slice %3 {offsets = [0, 1], sizes = [8, 1], strides = [1, 1]} : vector<8x3xf32> to vector<8x1xf32>
    %13 = vector.extract_strided_slice %1 {offsets = [1, 0], sizes = [1, 128], strides = [1, 1]} : vector<3x128xf32> to vector<1x128xf32>
    %14 = vector.broadcast %12 : vector<8x1xf32> to vector<8x128xf32>
    %15 = vector.broadcast %13 : vector<1x128xf32> to vector<8x128xf32>
    %16 = arith.subf %14, %15 : vector<8x128xf32>
    %17 = arith.mulf %16, %16 : vector<8x128xf32>
    %18 = arith.addf %11, %17 : vector<8x128xf32>
    %19 = vector.extract_strided_slice %3 {offsets = [0, 2], sizes = [8, 1], strides = [1, 1]} : vector<8x3xf32> to vector<8x1xf32>
    %20 = vector.extract_strided_slice %1 {offsets = [2, 0], sizes = [1, 128], strides = [1, 1]} : vector<3x128xf32> to vector<1x128xf32>
    %21 = vector.broadcast %19 : vector<8x1xf32> to vector<8x128xf32>
    %22 = vector.broadcast %20 : vector<1x128xf32> to vector<8x128xf32>
    %23 = arith.subf %21, %22 : vector<8x128xf32>
    %24 = arith.mulf %23, %23 : vector<8x128xf32>
    %25 = arith.addf %18, %24 : vector<8x128xf32>
    %cst_5 = arith.constant 9.99999993E-9 : f32
    %26 = vector.broadcast %cst_5 : f32 to vector<8x128xf32>
    %27 = arith.addf %25, %26 : vector<8x128xf32>
    %28 = tpu.iota {dimensions = array<i32: 0>} : vector<8x128xi32>
    %29 = tpu.bitcast %27 : vector<8x128xf32> -> vector<8x128xi32>
    %c-8_i32 = arith.constant -8 : i32
    %30 = vector.broadcast %c-8_i32 : i32 to vector<8x128xi32>
    %31 = arith.andi %29, %30 : vector<8x128xi32>
    %32 = arith.ori %31, %28 : vector<8x128xi32>
    %33 = tpu.bitcast %32 : vector<8x128xi32> -> vector<8x128xf32>
    %cst_6 = arith.constant 0.000000e+00 : f32
    %34 = vector.broadcast %cst_6 : f32 to vector<8x128xf32>
    %cst_7 = arith.constant 0.000000e+00 : f32
    %35 = vector.broadcast %cst_7 : f32 to vector<1x128xf32>
    %cst_8 = arith.constant dense<0x7F800000> : vector<128xf32>
    %36 = vector.multi_reduction <minimumf>, %33, %cst_8 [0] : vector<8x128xf32> to vector<128xf32>
    %37 = vector.shape_cast %36 : vector<128xf32> to vector<1x128xf32>
    %38 = vector.broadcast %37 : vector<1x128xf32> to vector<8x128xf32>
    %39 = arith.cmpf oeq, %33, %38 : vector<8x128xf32>
    %40 = tpu.bitcast %37 : vector<1x128xf32> -> vector<1x128xi32>
    %c-8_i32_9 = arith.constant -8 : i32
    %41 = vector.broadcast %c-8_i32_9 : i32 to vector<1x128xi32>
    %42 = arith.andi %40, %41 : vector<1x128xi32>
    %43 = tpu.bitcast %42 : vector<1x128xi32> -> vector<1x128xf32>
    %cst_10 = arith.constant 1.000000e+00 : f32
    %44 = vector.broadcast %cst_10 : f32 to vector<1x128xf32>
    %45 = arith.divf %44, %43 : vector<1x128xf32>
    %cst_11 = arith.constant 0.000000e+00 : f32
    %46 = vector.shape_cast %45 : vector<1x128xf32> to vector<1x128xf32>
    %47 = vector.broadcast %46 : vector<1x128xf32> to vector<8x128xf32>
    %48 = vector.broadcast %cst_11 : f32 to vector<8x128xf32>
    %49 = arith.select %39, %47, %48 : vector<8x128xi1>, vector<8x128xf32>
    %50 = arith.addf %34, %49 : vector<8x128xf32>
    %51 = arith.addf %35, %45 : vector<1x128xf32>
    %cst_12 = arith.constant 0x7F800000 : f32
    %52 = vector.broadcast %cst_12 : f32 to vector<8x128xf32>
    %53 = arith.select %39, %52, %33 : vector<8x128xi1>, vector<8x128xf32>
    %cst_13 = arith.constant dense<0x7F800000> : vector<128xf32>
    %54 = vector.multi_reduction <minimumf>, %53, %cst_13 [0] : vector<8x128xf32> to vector<128xf32>
    %55 = vector.shape_cast %54 : vector<128xf32> to vector<1x128xf32>
    %56 = vector.broadcast %55 : vector<1x128xf32> to vector<8x128xf32>
    %57 = arith.cmpf oeq, %53, %56 : vector<8x128xf32>
    %58 = tpu.bitcast %55 : vector<1x128xf32> -> vector<1x128xi32>
    %c-8_i32_14 = arith.constant -8 : i32
    %59 = vector.broadcast %c-8_i32_14 : i32 to vector<1x128xi32>
    %60 = arith.andi %58, %59 : vector<1x128xi32>
    %61 = tpu.bitcast %60 : vector<1x128xi32> -> vector<1x128xf32>
    %cst_15 = arith.constant 1.000000e+00 : f32
    %62 = vector.broadcast %cst_15 : f32 to vector<1x128xf32>
    %63 = arith.divf %62, %61 : vector<1x128xf32>
    %cst_16 = arith.constant 0.000000e+00 : f32
    %64 = vector.shape_cast %63 : vector<1x128xf32> to vector<1x128xf32>
    %65 = vector.broadcast %64 : vector<1x128xf32> to vector<8x128xf32>
    %66 = vector.broadcast %cst_16 : f32 to vector<8x128xf32>
    %67 = arith.select %57, %65, %66 : vector<8x128xi1>, vector<8x128xf32>
    %68 = arith.addf %50, %67 : vector<8x128xf32>
    %69 = arith.addf %51, %63 : vector<1x128xf32>
    %cst_17 = arith.constant 0x7F800000 : f32
    %70 = vector.broadcast %cst_17 : f32 to vector<8x128xf32>
    %71 = arith.select %57, %70, %53 : vector<8x128xi1>, vector<8x128xf32>
    %cst_18 = arith.constant dense<0x7F800000> : vector<128xf32>
    %72 = vector.multi_reduction <minimumf>, %71, %cst_18 [0] : vector<8x128xf32> to vector<128xf32>
    %73 = vector.shape_cast %72 : vector<128xf32> to vector<1x128xf32>
    %74 = vector.broadcast %73 : vector<1x128xf32> to vector<8x128xf32>
    %75 = arith.cmpf oeq, %71, %74 : vector<8x128xf32>
    %76 = tpu.bitcast %73 : vector<1x128xf32> -> vector<1x128xi32>
    %c-8_i32_19 = arith.constant -8 : i32
    %77 = vector.broadcast %c-8_i32_19 : i32 to vector<1x128xi32>
    %78 = arith.andi %76, %77 : vector<1x128xi32>
    %79 = tpu.bitcast %78 : vector<1x128xi32> -> vector<1x128xf32>
    %cst_20 = arith.constant 1.000000e+00 : f32
    %80 = vector.broadcast %cst_20 : f32 to vector<1x128xf32>
    %81 = arith.divf %80, %79 : vector<1x128xf32>
    %cst_21 = arith.constant 0.000000e+00 : f32
    %82 = vector.shape_cast %81 : vector<1x128xf32> to vector<1x128xf32>
    %83 = vector.broadcast %82 : vector<1x128xf32> to vector<8x128xf32>
    %84 = vector.broadcast %cst_21 : f32 to vector<8x128xf32>
    %85 = arith.select %75, %83, %84 : vector<8x128xi1>, vector<8x128xf32>
    %86 = arith.addf %68, %85 : vector<8x128xf32>
    %87 = arith.addf %69, %81 : vector<1x128xf32>
    %cst_22 = arith.constant 1.000000e+00 : f32
    %88 = vector.broadcast %cst_22 : f32 to vector<1x128xf32>
    %89 = arith.divf %88, %87 : vector<1x128xf32>
    %90 = vector.broadcast %89 : vector<1x128xf32> to vector<8x128xf32>
    %91 = arith.mulf %86, %90 : vector<8x128xf32>
    %c0_23 = arith.constant 0 : index
    %c0_24 = arith.constant 0 : index
    %c0_25 = arith.constant 0 : index
    %92 = vector.load %arg4[%c0_23, %c0_24, %c0_25] : memref<1x16x8xbf16, #tpu.memory_space<vmem>>, vector<1x16x8xbf16>
    %93 = vector.shape_cast %92 : vector<1x16x8xbf16> to vector<16x8xbf16>
    %94 = arith.truncf %91 : vector<8x128xf32> to vector<8x128xbf16>
    %cst_26 = arith.constant dense<0.000000e+00> : vector<16x128xf32>
    %95 = tpu.matmul %93, %94, %cst_26 {dimension_numbers = #tpu.dot_dimension_numbers<[1], [0], [0], [1], [0, 0, 1, 1], [], []>} : vector<16x8xbf16>, vector<8x128xbf16>, vector<16x128xf32> -> vector<16x128xf32>
    %c0_27 = arith.constant 0 : index
    %c0_28 = arith.constant 0 : index
    %96 = vector.load %arg6[%c0_27, %c0_28] : memref<32x16xbf16, #tpu.memory_space<vmem>>, vector<32x16xbf16>
    %97 = arith.truncf %95 : vector<16x128xf32> to vector<16x128xbf16>
    %cst_29 = arith.constant dense<0.000000e+00> : vector<32x128xf32>
    %98 = tpu.matmul %96, %97, %cst_29 {dimension_numbers = #tpu.dot_dimension_numbers<[1], [0], [0], [1], [0, 0, 1, 1], [], []>} : vector<32x16xbf16>, vector<16x128xbf16>, vector<32x128xf32> -> vector<32x128xf32>
    %c0_30 = arith.constant 0 : index
    %c0_31 = arith.constant 0 : index
    %99 = vector.load %arg7[%c0_30, %c0_31] : memref<32x8xbf16, #tpu.memory_space<vmem>>, vector<32x8xbf16>
    %c0_32 = arith.constant 0 : index
    %c0_33 = arith.constant 0 : index
    %c0_34 = arith.constant 0 : index
    %100 = vector.load %arg5[%c0_32, %c0_33, %c0_34] : memref<1x8x128xf32, #tpu.memory_space<vmem>>, vector<1x8x128xf32>
    %101 = vector.shape_cast %100 : vector<1x8x128xf32> to vector<8x128xf32>
    %102 = arith.truncf %101 : vector<8x128xf32> to vector<8x128xbf16>
    %cst_35 = arith.constant dense<0.000000e+00> : vector<32x128xf32>
    %103 = tpu.matmul %99, %102, %cst_35 {dimension_numbers = #tpu.dot_dimension_numbers<[1], [0], [0], [1], [0, 0, 1, 1], [], []>} : vector<32x8xbf16>, vector<8x128xbf16>, vector<32x128xf32> -> vector<32x128xf32>
    %104 = arith.addf %98, %103 : vector<32x128xf32>
    %c128_i32 = arith.constant 128 : i32
    %105 = arith.muli %arg1, %c128_i32 : i32
    %106 = tpu.iota {dimensions = array<i32: 1>} : vector<1x128xi32>
    %107 = vector.broadcast %105 : i32 to vector<1x128xi32>
    %108 = arith.addi %107, %106 : vector<1x128xi32>
    %c16_i32 = arith.constant 16 : i32
    %109 = vector.broadcast %c16_i32 : i32 to vector<1x128xi32>
    %110 = arith.cmpi slt, %108, %109 : vector<1x128xi32>
    %cst_36 = arith.constant 0.000000e+00 : f32
    %111 = vector.shape_cast %110 : vector<1x128xi1> to vector<1x128xi1>
    %112 = vector.broadcast %111 : vector<1x128xi1> to vector<32x128xi1>
    %113 = vector.broadcast %cst_36 : f32 to vector<32x128xf32>
    %114 = arith.select %112, %104, %113 : vector<32x128xi1>, vector<32x128xf32>
    %115 = arith.truncf %114 : vector<32x128xf32> to vector<32x128xbf16>
    %c0_37 = arith.constant 0 : index
    %c0_38 = arith.constant 0 : index
    %c0_39 = arith.constant 0 : index
    %116 = vector.load %arg8[%c0_37, %c0_38, %c0_39] : memref<1x32x128xbf16, #tpu.memory_space<vmem>>, vector<1x32x128xbf16>
    %117 = vector.shape_cast %116 : vector<1x32x128xbf16> to vector<32x128xbf16>
    %118 = vector.shape_cast %115 : vector<32x128xbf16> to vector<1x32x128xbf16>
    tpu.vector_store %arg8[%c0_37, %c0_38, %c0_39], %118 {strides = array<i32>} : memref<1x32x128xbf16, #tpu.memory_space<vmem>>, vector<1x32x128xbf16>,
    %c0_i32 = arith.constant 0 : i32
    %119 = arith.cmpi eq, %arg1, %c0_i32 : i32
    %120 = arith.extui %119 : i1 to i32
    %c0_i32_40 = arith.constant 0 : i32
    %121 = arith.cmpi ne, %120, %c0_i32_40 : i32
    scf.if %121 {
      %cst_55 = arith.constant 0.000000e+00 : f32
      %139 = vector.broadcast %cst_55 : f32 to vector<32x1xf32>
      %c0_56 = arith.constant 0 : index
      %c0_57 = arith.constant 0 : index
      %c0_58 = arith.constant 0 : index
      %140 = vector.load %arg9[%c0_56, %c0_57, %c0_58] : memref<1x32x1xf32, #tpu.memory_space<vmem>>, vector<1x32x1xf32>
      %141 = vector.shape_cast %140 : vector<1x32x1xf32> to vector<32x1xf32>
      %142 = vector.shape_cast %139 : vector<32x1xf32> to vector<1x32x1xf32>
      tpu.vector_store %arg9[%c0_56, %c0_57, %c0_58], %142 {strides = array<i32>} : memref<1x32x1xf32, #tpu.memory_space<vmem>>, vector<1x32x1xf32>,
      %cst_59 = arith.constant 0.000000e+00 : f32
      %143 = vector.broadcast %cst_59 : f32 to vector<32x1xf32>
      %c0_60 = arith.constant 0 : index
      %c0_61 = arith.constant 0 : index
      %c0_62 = arith.constant 0 : index
      %144 = vector.load %arg10[%c0_60, %c0_61, %c0_62] : memref<1x32x1xf32, #tpu.memory_space<vmem>>, vector<1x32x1xf32>
      %145 = vector.shape_cast %144 : vector<1x32x1xf32> to vector<32x1xf32>
      %146 = vector.shape_cast %143 : vector<32x1xf32> to vector<1x32x1xf32>
      tpu.vector_store %arg10[%c0_60, %c0_61, %c0_62], %146 {strides = array<i32>} : memref<1x32x1xf32, #tpu.memory_space<vmem>>, vector<1x32x1xf32>,
    } else {
    }
    %c0_41 = arith.constant 0 : index
    %c0_42 = arith.constant 0 : index
    %c0_43 = arith.constant 0 : index
    %122 = vector.load %arg9[%c0_41, %c0_42, %c0_43] : memref<1x32x1xf32, #tpu.memory_space<vmem>>, vector<1x32x1xf32>
    %123 = vector.shape_cast %122 : vector<1x32x1xf32> to vector<32x1xf32>
    %cst_44 = arith.constant dense<0.000000e+00> : vector<32xf32>
    %124 = vector.multi_reduction <add>, %114, %cst_44 [1] : vector<32x128xf32> to vector<32xf32>
    %125 = vector.shape_cast %124 : vector<32xf32> to vector<32x1xf32>
    %126 = arith.addf %123, %125 : vector<32x1xf32>
    %c0_45 = arith.constant 0 : index
    %c0_46 = arith.constant 0 : index
    %c0_47 = arith.constant 0 : index
    %127 = vector.load %arg9[%c0_45, %c0_46, %c0_47] : memref<1x32x1xf32, #tpu.memory_space<vmem>>, vector<1x32x1xf32>
    %128 = vector.shape_cast %127 : vector<1x32x1xf32> to vector<32x1xf32>
    %129 = vector.shape_cast %126 : vector<32x1xf32> to vector<1x32x1xf32>
    tpu.vector_store %arg9[%c0_45, %c0_46, %c0_47], %129 {strides = array<i32>} : memref<1x32x1xf32, #tpu.memory_space<vmem>>, vector<1x32x1xf32>,
    %c0_48 = arith.constant 0 : index
    %c0_49 = arith.constant 0 : index
    %c0_50 = arith.constant 0 : index
    %130 = vector.load %arg10[%c0_48, %c0_49, %c0_50] : memref<1x32x1xf32, #tpu.memory_space<vmem>>, vector<1x32x1xf32>
    %131 = vector.shape_cast %130 : vector<1x32x1xf32> to vector<32x1xf32>
    %132 = arith.mulf %114, %114 : vector<32x128xf32>
    %cst_51 = arith.constant dense<0.000000e+00> : vector<32xf32>
    %133 = vector.multi_reduction <add>, %132, %cst_51 [1] : vector<32x128xf32> to vector<32xf32>
    %134 = vector.shape_cast %133 : vector<32xf32> to vector<32x1xf32>
    %135 = arith.addf %131, %134 : vector<32x1xf32>
    %c0_52 = arith.constant 0 : index
    %c0_53 = arith.constant 0 : index
    %c0_54 = arith.constant 0 : index
    %136 = vector.load %arg10[%c0_52, %c0_53, %c0_54] : memref<1x32x1xf32, #tpu.memory_space<vmem>>, vector<1x32x1xf32>
    %137 = vector.shape_cast %136 : vector<1x32x1xf32> to vector<32x1xf32>
    %138 = vector.shape_cast %135 : vector<32x1xf32> to vector<1x32x1xf32>
    tpu.vector_store %arg10[%c0_52, %c0_53, %c0_54], %138 {strides = array<i32>} : memref<1x32x1xf32, #tpu.memory_space<vmem>>, vector<1x32x1xf32>,
    return
  }
  func.func @transform_0(%arg0: i32, %arg1: i32) -> (i32, i32, i32) {
    %c0_i32 = arith.constant 0 : i32
    %c0_i32_0 = arith.constant 0 : i32
    return %arg0, %c0_i32, %arg1 : i32, i32, i32
  }
  func.func @transform_1(%arg0: i32, %arg1: i32) -> (i32, i32, i32) {
    %c0_i32 = arith.constant 0 : i32
    %c0_i32_0 = arith.constant 0 : i32
    %c0_i32_1 = arith.constant 0 : i32
    return %arg0, %c0_i32, %c0_i32_0 : i32, i32, i32
  }
  func.func @transform_2(%arg0: i32, %arg1: i32) -> (i32, i32, i32) {
    %c0_i32 = arith.constant 0 : i32
    %c0_i32_0 = arith.constant 0 : i32
    %c0_i32_1 = arith.constant 0 : i32
    return %arg0, %c0_i32, %c0_i32_0 : i32, i32, i32
  }
  func.func @transform_3(%arg0: i32, %arg1: i32) -> (i32, i32, i32) {
    %c0_i32 = arith.constant 0 : i32
    %c0_i32_0 = arith.constant 0 : i32
    return %arg0, %c0_i32, %arg1 : i32, i32, i32
  }
  func.func @transform_4(%arg0: i32, %arg1: i32) -> (i32, i32) {
    %c0_i32 = arith.constant 0 : i32
    %c0_i32_0 = arith.constant 0 : i32
    %c0_i32_1 = arith.constant 0 : i32
    return %c0_i32, %c0_i32_0 : i32, i32
  }
  func.func @transform_5(%arg0: i32, %arg1: i32) -> (i32, i32) {
    %c0_i32 = arith.constant 0 : i32
    %c0_i32_0 = arith.constant 0 : i32
    %c0_i32_1 = arith.constant 0 : i32
    return %c0_i32, %c0_i32_0 : i32, i32
  }
  func.func @transform_6(%arg0: i32, %arg1: i32) -> (i32, i32, i32) {
    %c0_i32 = arith.constant 0 : i32
    %c0_i32_0 = arith.constant 0 : i32
    return %arg0, %c0_i32, %arg1 : i32, i32, i32
  }
  func.func @transform_7(%arg0: i32, %arg1: i32) -> (i32, i32, i32) {
    %c0_i32 = arith.constant 0 : i32
    %c0_i32_0 = arith.constant 0 : i32
    %c0_i32_1 = arith.constant 0 : i32
    return %arg0, %c0_i32, %c0_i32_0 : i32, i32, i32
  }
  func.func @transform_8(%arg0: i32, %arg1: i32) -> (i32, i32, i32) {
    %c0_i32 = arith.constant 0 : i32
    %c0_i32_0 = arith.constant 0 : i32
    %c0_i32_1 = arith.constant 0 : i32
    return %arg0, %c0_i32, %c0_i32_0 : i32, i32, i32
  }
}

</mosaic_0001>

<bundles_post_ra>
// kernel: tpu_custom_call.1
= control target key start
LH: loop header
LB: loop body
LE: loop exit
PB: predicated region body
PF: predicated region fallthrough
CT: control target
= control target key end

     0   :  { %s1511_s0 = inlined_call_operand.vmem [shape: f32[2,3,128], index: 0, kind: input, shape index: {}]   ;;  %s1512_s1 = inlined_call_operand.vmem [shape: f32[2,8,3], index: 1, kind: input, shape index: {}]   ;;  %s1513_s2 = inlined_call_operand.vmem [shape: bf16[2,16,8], index: 2, kind: input, shape index: {}]   ;;  %s1514_s3 = inlined_call_operand.vmem [shape: f32[2,8,128], index: 3, kind: input, shape index: {}]   ;;  %s1515_s4 = inlined_call_operand.vmem [shape: bf16[32,16], index: 4, kind: input, shape index: {}]   ;;  %s1516_s5 = inlined_call_operand.vmem [shape: bf16[32,8], index: 5, kind: input, shape index: {}]   ;;  %s1517_s6 = inlined_call_operand.hbm [shape: bf16[2,32,128], index: 6, kind: output, shape index: {0}]   ;;  %s1518_s7 = inlined_call_operand.vmem [shape: f32[2,32,1], index: 7, kind: output, shape index: {1}]   ;;  %s1519_s8 = inlined_call_operand.vmem [shape: f32[2,32,1], index: 8, kind: output, shape index: {2}]  }
   0x1   :  { %1520 = sst [smem:[#allocation5_spill]] %s1511_s0 }
   0x2   :  { %14 = vsyncpa [#allocation3], 0 }
   0x3   :  { %16 = vsyncpa [#allocation3 + $0x1], 0  ;;  %s1287_s27 = smov 0   ;;  %s1289_s28 = smov 0  }
   0x4   :  { %s1291_s29 = smov 0   ;;  %s1293_s30 = smov 0  }
   0x5   :  { %s1295_s9 = smov 0   ;;  %s1297_s10 = smov 0  }
   0x6 LB: > { %s997_s11 = sadd.s32 4294967295, %s1232_s10   ;;  %s998_s12 = sadd.s32 4294967294, %s1232_s10   ;;  %s1232_s10 = sphi %s1297_s10, %s22_s10   ;;  %s1228_s9 = sphi %s1295_s9, %s1528_s9   ;;  %s1224_s30 = sphi %s1293_s30, %s1527_s30   ;;  %s1220_s29 = sphi %s1291_s29, %s1526_s29   ;;  %s1216_s28 = sphi %s1289_s28, %s1525_s28   ;;  %s1212_s27 = sphi %s1287_s27, %s1524_s27  }
   0x7   : > { %s34_s13 = sadd.s32 1, %s1228_s9  ;;  %s193_s14 = sadd.s32 1, %s1220_s29 }
   0x8   : > { %p36_p0 = scmp.ge.s32.totalorder %s34_s13, 2  ;;  %p203_p1 = scmp.ne.s32.totalorder %s1220_s29, %s1216_s28 }
   0x9   : > { %p204_p2 = scmp.eq.s32.totalorder %s997_s11, 1  ;;  %p209_p3 = scmp.ne.s32.totalorder %s1216_s28, %s1212_s27 }
   0xa   : > { %s1530_s13 = smov (%p36_p0, %s34_s13), 0  ;;  %p210_p5 = scmp.eq.s32.totalorder %s998_s12, 1 }
   0xb   : > { %p1327_p4 = por %p204_p2, %p203_p1  ;;  %s188_s16 = ssub.s32 %s1228_s9, %s1530_s13 }
   0xc   : > { %p1001_p6 = scmp.ge.s32.totalorder %s1232_s10, 1  ;;  %p191_p7 = scmp.eq.s32.totalorder %s188_s16, 0 }
   0xd   : > { %p1334_p8 = por %p210_p5, %p209_p3  ;;  %p321_p9 = scmp.lt.s32.totalorder %s1232_s10, 3 }
   0xe   : > { %s1340_s18 = scalar_select %p191_p7, %s1220_s29, %s193_s14  }
   0xf   : > { %p322_p10 = pnand %p1001_p6, %p321_p9 }
  0x10   : > { %p383_p11 = scmp.lt.s32.totalorder (!%p322_p10), %s1224_s30, 1  ;;  %s1523_s0 = sld [smem:[#allocation5_spill]] (!%p322_p10) }
  0x11   : > { %325 = sbr.rel (%p322_p10) target bundleno = 806 (0x326), region = 44  ;;  %s1038_s22 = sshll.u32 (!%p322_p10), %s1224_s30, 8 }
  0x16   : > { %v1234_v0 = vmov 0   ;;  %v1235_v1 = vmov 2   ;;  %s1344_s19 = scalar_select %p383_p11, %s1224_s30, 1  ;;  %v1236_v3 = vmov 1   ;;  %v1237_v4 = vmov 0.0  }
  0x17   : > { %1139 = vset.pattern.permute.xlu0 %v1234_v0  ;;  %1141 = vset.pattern.permute.xlu1 %v1235_v1  ;;  %vm1238_vm0 = vmmov 0   ;;  %v424_v5 = vlaneseq  ;;  %vm522_vm4 = vcmask 1043456   ;;  %vm518_vm5 = vcmask 64512  }
  0x18   : > { %s1347_s20 = sshll.u32 %s1344_s19, 3  ;;  %1058 = vmatprep.subr.bf16.mxu0 %v1237_v4  ;;  %1060 = vmatprep.mubr.msk.bf16.mxu0 %vm1238_vm0, %v1237_v4  ;;  %s1003_s11 = sshll.u32 %s1344_s19, 2  ;;  %vm656_vm6 = vcmask 130048   ;;  %vm748_vm7 = vcmask 7168  }
  0x19   : > { %s393_s23 = scalar_lea.vmem %s1512_s1, %s1347_s20  ;;  %s398_s26 = scalar_lea.vmem %s1513_s2, %s1347_s20  ;;  %v425_v6 = vshrl.u32 %v424_v5, 7 }
  0x1a   : > { %v418_v2 = vld [vmem:[%s393_s23] sm:$0xff]  ;;  %s389_s16 = scalar_lea.vmem %s1523_s0, %s1003_s11  ;;  %s405_s25 = scalar_lea.vmem %s1514_s3, %s1347_s20 }
  0x1b   : > { %421 = vperm.xlu0 %1139, %v418_v2   ;;  %443 = vperm.xlu1 %1141, %v418_v2   ;;  %v426_v7 = vsub.s32 0, %v425_v6  ;;  %v448_v8 = vsub.s32 2, %v425_v6  ;;  %v417_v9 = vld [vmem:[%s389_s16] sm:$0x7]  ;;  %v437_v10 = vsub.s32 1, %v425_v6  ;;  %s1032_s23 = sshll.u32 %s1344_s19, 5 }
  0x1c   : > { %s1393_s11 = scalar_lea.vmem %s1518_s7, %s1032_s23  ;;  %s1398_s16 = scalar_lea.vmem %s1519_s8, %s1032_s23 }
  0x1d   : > { %v427_v12 = vrot.slane %v417_v9, %v426_v7  ;;  %v449_v13 = vrot.slane %v417_v9, %v448_v8  ;;  %v438_v15 = vrot.slane %v417_v9, %v437_v10  ;;  %v1144_v7 = vld [vmem:[%s1516_s5] sm:$0xff]   ;;  %v1145_v8 = vld [vmem:[%s1516_s5 + $0x8] sm:$0xff]   ;;  %751 = vst.msk [vmem:[%s1393_s11 + $0x10] sm:$0xff] %vm748_vm7, %v1237_v4  ;;  %749 = vst.msk [vmem:[%s1393_s11] sm:$0xff] %vm748_vm7, %v1237_v4  ;;  %s366_s19 = sand.u32 1, %s1216_s28  }
  0x1e   : > { %1066 = vmatprep.mubr.msk.bf16.mxu1 %vm518_vm5, %v1144_v7  ;;  %v1146_v9 = vld [vmem:[%s1515_s4] sm:$0xff]   ;;  %750 = vst.msk [vmem:[%s1393_s11 + $0x8] sm:$0xff] %vm748_vm7, %v1237_v4  ;;  %752 = vst.msk [vmem:[%s1393_s11 + $0x18] sm:$0xff] %vm748_vm7, %v1237_v4  ;;  %s1442_s12 = scalar_lea.sflag [#allocation3], %s366_s19 }
  0x1f   : > { %1140 = vset.pattern.permute.xlu0 %v1236_v3  ;;  %753 = vst.msk [vmem:[%s1398_s16] sm:$0xff] %vm748_vm7, %v1237_v4  ;;  %754 = vst.msk [vmem:[%s1398_s16 + $0x8] sm:$0xff] %vm748_vm7, %v1237_v4 }
  0x20   : > { %432 = vperm.xlu0 %1140, %v418_v2   ;;  %v576_v2 = vld [vmem:[%s405_s25] sm:$0xff]  ;;  %755 = vst.msk [vmem:[%s1398_s16 + $0x10] sm:$0xff] %vm748_vm7, %v1237_v4  ;;  %756 = vst.msk [vmem:[%s1398_s16 + $0x18] sm:$0xff] %vm748_vm7, %v1237_v4  ;;  %s1438_s25 = scalar_lea.hbm %s1517_s6, %s1038_s22 }
  0x21   : > { %v577_v3 = vpack.c.bf16 %v576_v2, %v576_v2 }
  0x23   : > { %1076 = vmatprep.subr.msk.bf16.mxu1 %vm522_vm4, %v577_v3 }
  0x24   : > { %1142 = vset.pattern.permute.xlu0 %v1235_v1  ;;  %v1143_v1 = vld [vmem:[%s398_s26] sm:$0xff]   ;;  %s1002_s26 = sshll.u32 %s366_s19, 4 }
  0x25   : > { %s368_s21 = scalar_lea.vmem [#allocation2], %s1002_s26  ;;  %s1239_s26 = smov [#allocation2]  }
  0x26   : > { %s827_s20 = sshll.u32 %s368_s21, 4  ;;  %s1432_s20 = int_to_ptr.vmem [resolvable:$true] %s827_s20 }
  0x27   : > { %s1156_s14 = scalar_lea.vmem %s1432_s20, 256 }
  0x28   : > { %p1157_p12 = scmp.ne.s32.totalorder %s1432_s20, %s1156_s14 }
  0x2a   : > { %p1158_p13 = pnand %p1157_p12, %p1327_p4 }
  0x2c   : > { %p1159_p0 = pneg %p1158_p13 }
  0x96   : > { %v422_v11 = vpop.permute.xlu0 %421  ;;  %v444_v14 = vpop.permute.xlu1 %443 }
  0x97   : > { %v428_v16 = vsub.f32 %v422_v11, %v427_v12  ;;  %v450_v17 = vsub.f32 %v444_v14, %v449_v13 }
  0x99   : > { %v429_v20 = vmul.f32 %v428_v16, %v428_v16  ;;  %v451_v22 = vmul.f32 %v450_v17, %v450_v17  ;;  %v714_v17 = vand.u32 127, %v424_v5 }
  0x9b   : > { %v433_v18 = vpop.permute.xlu0 %432  ;;  %vm717_vm8 = vcmp.lt.s32.totalorder %v714_v17, 16 }
  0x9c   : > { %v439_v19 = vsub.f32 %v433_v18, %v438_v15  ;;  %v1147_v15 = vld [vmem:[%s1515_s4 + $0x8] sm:$0xff]  }
  0x9e   : > { %v440_v21 = vmul.f32 %v439_v19, %v439_v19 }
  0xa0   : > { %v441_v23 = vadd.f32 %v440_v21, %v429_v20 }
  0xa2   : > { %v452_v24 = vadd.f32 %v451_v22, %v441_v23 }
  0xa4   : > { %v453_v25 = vadd.f32 1e-08, %v452_v24 }
  0xa6   : > { %v457_v26 = vand.u32 4294967288, %v453_v25 }
  0xa8   : > { %v458_v27 = vor.u32 %v457_v26, %v425_v6  ;;  %v595_v6 = vsel %vm522_vm4, %v577_v3, 0 }
  0xa9   : > { %1065 = vmatpush3.bf16.msra.mxu1 %v595_v6 }
  0xaa   : > { %v460_v28 = vrot.slane %v458_v27, 4 }
  0xac   : > { %v461_v29 = vmin.f32 %v458_v27, %v460_v28  ;;  %1067 = vmatmul.mubr.msk.bf16.vlgmr.msra.gmra.mxu1 %vm518_vm5, %v1145_v8 }
  0xae   : > { %v462_v30 = vrot.slane %v461_v29, 2 }
  0xb0   : > { %v463_v31 = vmin.f32 %v461_v29, %v462_v30 }
  0xb2   : > { %v464_v32 = vrot.slane %v463_v31, 1 }
  0xb4   : > { %v465_v33 = vmin.f32 %v463_v31, %v464_v32 }
  0xb6   : > { %vm466_vm1 = vcmp.eq.f32.partialorder %v458_v27, %v465_v33  ;;  %v468_v47 = vand.u32 4294967288, %v465_v33 }
  0xb7   : > { %v475_v34 = vsel %vm466_vm1, inf, %v458_v27 }
  0xb8   : > { %v476_v35 = vrot.slane %v475_v34, 4 }
  0xba   : > { %v477_v36 = vmin.f32 %v475_v34, %v476_v35 }
  0xbc   : > { %v478_v37 = vrot.slane %v477_v36, 2 }
  0xbe   : > { %v479_v38 = vmin.f32 %v477_v36, %v478_v37 }
  0xc0   : > { %v480_v39 = vrot.slane %v479_v38, 1 }
  0xc2   : > { %v481_v40 = vmin.f32 %v479_v38, %v480_v39 }
  0xc4   : > { %vm482_vm2 = vcmp.eq.f32.partialorder %v475_v34, %v481_v40  ;;  %v484_v45 = vand.u32 4294967288, %v481_v40 }
  0xc5   : > { %v491_v41 = vsel %vm482_vm2, inf, %v475_v34 }
  0xc6   : > { %v492_v42 = vrot.slane %v491_v41, 4  ;;  %1148 = vrcp.f32 %v484_v45 }
  0xc7   : > { %1150 = vrcp.f32 %v468_v47 }
  0xc8   : > { %v493_v43 = vmin.f32 %v491_v41, %v492_v42 }
  0xca   : > { %v494_v44 = vrot.slane %v493_v43, 2 }
  0xcc   : > { %v495_v46 = vmin.f32 %v493_v43, %v494_v44 }
  0xce   : > { %v496_v48 = vrot.slane %v495_v46, 1 }
  0xd0   : > { %v497_v49 = vmin.f32 %v495_v46, %v496_v48 }
  0xd2   : > { %v500_v50 = vand.u32 4294967288, %v497_v49  ;;  %vm498_vm3 = vcmp.eq.f32.partialorder %v491_v41, %v497_v49 }
  0xd3   : > { %v1149_v51 = vpop.eup %1148 }
  0xd4   : > { %1152 = vrcp.f32 %v500_v50  ;;  %v1151_v52 = vpop.eup %1150  ;;  %v488_v56 = vsel %vm482_vm2, %v1149_v51, 0.0 }
  0xd5   : > { %v490_v53 = vadd.f32 %v1151_v52, %v1149_v51  ;;  %v472_v57 = vsel %vm466_vm1, %v1151_v52, 0.0 }
  0xd6   : > { %v489_v59 = vadd.f32 %v488_v56, %v472_v57 }
  0xe1   : > { %v1153_v54 = vpop.eup %1152 }
  0xe2   : > { %v506_v55 = vadd.f32 %v1153_v54, %v490_v53  ;;  %v504_v58 = vsel %vm498_vm3, %v1153_v54, 0.0 }
  0xe3   : > { %v505_v60 = vadd.f32 %v504_v58, %v489_v59 }
  0xe4   : > { %1154 = vrcp.f32 %v506_v55 }
  0xf1   : > { %v1155_v61 = vpop.eup %1154 }
  0xf2   : > { %v509_v62 = vmul.f32 %v1155_v61, %v505_v60 }
  0xf4   : > { %v512_v63 = vpack.c.bf16 %v509_v62, %v509_v62 }
  0xf6   : > { %v524_v0 = vsel %vm522_vm4, %v512_v63, 0 }
  0xf7   : > { %1059 = vmatpush3.bf16.msra.mxu0 %v524_v0 }
  0xfa   : > { %1061 = vmatmul.mubr.msk.bf16.vlgmr.msra.gmra.mxu0 %vm518_vm5, %v1143_v1 }
  0xfb   : > { %1072 = vmatprep.mubr.msk.bf16.mxu0 %vm656_vm6, %v1146_v9 }
 0x16c   : > { %v1068_v16 = vpop.f32.mrf.mxu1 }
 0x16e   : > { %v631_v18 = vpop.f32.mrf.mxu1 }
 0x170   : > { %v1069_v22 = vpop.f32.mrf.mxu1 }
 0x172   : > { %v634_v27 = vpop.f32.mrf.mxu1 }
 0x1ba   : > { %v560_v10 = vpop.f32.mrf.mxu0 }
 0x1bc   : > { %v1062_v11 = vpop.f32.mrf.mxu0 }
 0x1be   : > { %v563_v12 = vpop.f32.mrf.mxu0 }
 0x1bf   : > { %v571_v13 = vpack.c.bf16 %v563_v12, %v560_v10 }
 0x1c0   : > { %v1063_v14 = vpop.f32.mrf.mxu0 }
 0x1c1   : > { %1070 = vmatprep.subr.bf16.mxu0 %v571_v13 }
 0x1c2   : > { %1071 = vmatpush3.bf16.msra.mxu0 %v571_v13 }
 0x1c5   : > { %1073 = vmatmul.mubr.msk.bf16.vlgmr.msra.gmra.mxu0 %vm656_vm6, %v1147_v15 }
 0x285   : > { %v1074_v19 = vpop.f32.mrf.mxu0 }
 0x286   : > { %v706_v20 = vadd.f32 %v1074_v19, %v1068_v16 }
 0x287   : > { %v697_v21 = vpop.f32.mrf.mxu0 }
 0x288   : > { %v698_v23 = vadd.f32 %v697_v21, %v631_v18  ;;  %v722_v24 = vsel %vm717_vm8, %v706_v20, 0.0 }
 0x289   : > { %765 = vadd.xlane.f32.xlu1 %v722_v24  ;;  %v1075_v25 = vpop.f32.mrf.mxu0  ;;  %v784_v35 = vmul.f32 %v722_v24, %v722_v24 }
 0x28a   : > { %v709_v26 = vadd.f32 %v1075_v25, %v1069_v22  ;;  %v720_v29 = vsel %vm717_vm8, %v698_v23, 0.0 }
 0x28b   : > { %v700_v4 = vpop.f32.mrf.mxu0  ;;  %v782_v33 = vmul.f32 %v720_v29, %v720_v29 }
 0x28c   : > { %v701_v28 = vadd.f32 %v700_v4, %v634_v27  ;;  %v723_v5 = vsel %vm717_vm8, %v709_v26, 0.0 }
 0x28d   : > { %767 = vadd.xlane.f32.xlu0 %v723_v5  ;;  %v1047_v30 = vpack.c.bf16 %v723_v5, %v722_v24  ;;  %761 = vadd.xlane.f32.xlu1 %v720_v29  ;;  %v785_v36 = vmul.f32 %v723_v5, %v723_v5 }
 0x28e   : > { %v721_v31 = vsel %vm717_vm8, %v701_v28, 0.0 }
 0x28f   : > { %1049 = vst [vmem:[%s368_s21 + $0x8] sm:$0xff] %v1047_v30   ;;  %v1042_v32 = vpack.c.bf16 %v721_v31, %v720_v29  ;;  %v783_v34 = vmul.f32 %v721_v31, %v721_v31 }
 0x291   : > { %763 = vadd.xlane.f32.xlu0 %v721_v31  ;;  %1043 = vst [vmem:[%s368_s21] sm:$0xff] %v1042_v32   ;;  %786 = vadd.xlane.f32.xlu1 %v782_v33  ;;  %s1160_s21 = sshll.u32 %s1239_s26, 4  ;;  %s1161_s21 = int_to_ptr.vmem [resolvable:$false] %s1160_s21 }
 0x292   : > { %s1162_s0 = scalar_lea.vmem %s1161_s21, 512  ;;  %p1163_p1 = scmp.lt.s32.totalorder %s1432_s20, %s1161_s21 }
 0x293   : > { %p1164_p2 = scmp.lt.s32.totalorder %s1162_s0, %s1156_s14 }
 0x295   : > { %788 = vadd.xlane.f32.xlu0 %v783_v34  ;;  %790 = vadd.xlane.f32.xlu1 %v784_v35  ;;  %p1165_p3 = por %p1164_p2, %p1163_p1 }
 0x297   : > { %p1166_p5 = pnand %p1165_p3, %p1159_p0 }
 0x299   : > { %792 = vadd.xlane.f32.xlu0 %v785_v36 }
 0x29a   : > { %1169 = shalt.err (!%p1166_p5)
}
 0x29b   : > { %s1170_s30 = scalar_lea.hbm %s1438_s25, 256  ;;  %s1174_s23 = scalar_lea.hbm %s1517_s6, 512 }
 0x29c   : > { %p1171_p6 = scmp.ne.s32.totalorder %s1438_s25, %s1170_s30  ;;  %p1175_p10 = scmp.lt.s32.totalorder %s1438_s25, %s1517_s6 }
 0x29d   : > { %p1176_p11 = scmp.lt.s32.totalorder %s1174_s23, %s1170_s30 }
 0x29e   : > { %p1172_p7 = pnand %p1171_p6, %p1327_p4 }
 0x29f   : > { %p1177_p12 = por %p1176_p11, %p1175_p10 }
 0x2a0   : > { %p1173_p9 = pneg %p1172_p7 }
 0x2a2   : > { %p1178_p13 = pnand %p1177_p12, %p1173_p9 }
 0x2a4   : > { %1181 = shalt.err (!%p1178_p13)
}
 0x2a5   : > { %s1240_s0 = smov 64   ;;  %s1241_s14 = smov 4   ;;  %v759_v37 = vld [vmem:[%s1393_s11 + $0x10] sm:$0xff]  ;;  %v760_v40 = vld [vmem:[%s1393_s11 + $0x18] sm:$0xff]  ;;  %v757_v41 = vld [vmem:[%s1393_s11] sm:$0xff] }
 0x2a6   : > { %1077 = dma.vmem_to_hbm [thread:$0]  (%p1327_p4), %s1432_s20, 256, %s1438_s25, %s1442_s12, %s1240_s0, %s1240_s0, %s1241_s14  }
 0x2a7   : > { %v758_v46 = vld [vmem:[%s1393_s11 + $0x8] sm:$0xff]  ;;  %v778_v47 = vld [vmem:[%s1398_s16] sm:$0xff]  ;;  %v780_v53 = vld [vmem:[%s1398_s16 + $0x10] sm:$0xff] }
 0x2a8   : > { %v779_v52 = vld [vmem:[%s1398_s16 + $0x8] sm:$0xff]  ;;  %v781_v58 = vld [vmem:[%s1398_s16 + $0x18] sm:$0xff] }
 0x312   : > { %v766_v38 = vpop.xlane.xlu1 %765 }
 0x313   : > { %v771_v39 = vadd.f32 %v766_v38, %v759_v37 }
 0x315   : > { %776 = vst.msk [vmem:[%s1393_s11 + $0x10] sm:$0xff] %vm748_vm7, %v771_v39 }
 0x316   : > { %v768_v42 = vpop.xlane.xlu0 %767  ;;  %v762_v43 = vpop.xlane.xlu1 %761 }
 0x317   : > { %v772_v44 = vadd.f32 %v768_v42, %v760_v40  ;;  %v769_v45 = vadd.f32 %v762_v43, %v757_v41 }
 0x319   : > { %777 = vst.msk [vmem:[%s1393_s11 + $0x18] sm:$0xff] %vm748_vm7, %v772_v44  ;;  %774 = vst.msk [vmem:[%s1393_s11] sm:$0xff] %vm748_vm7, %v769_v45 }
 0x31a   : > { %v764_v48 = vpop.xlane.xlu0 %763  ;;  %v787_v49 = vpop.xlane.xlu1 %786 }
 0x31b   : > { %v770_v50 = vadd.f32 %v764_v48, %v758_v46  ;;  %v794_v51 = vadd.f32 %v787_v49, %v778_v47 }
 0x31d   : > { %775 = vst.msk [vmem:[%s1393_s11 + $0x8] sm:$0xff] %vm748_vm7, %v770_v50  ;;  %798 = vst.msk [vmem:[%s1398_s16] sm:$0xff] %vm748_vm7, %v794_v51 }
 0x31e   : > { %v789_v54 = vpop.xlane.xlu0 %788  ;;  %v791_v55 = vpop.xlane.xlu1 %790 }
 0x31f   : > { %v795_v56 = vadd.f32 %v789_v54, %v779_v52  ;;  %v796_v57 = vadd.f32 %v791_v55, %v780_v53 }
 0x321   : > { %799 = vst.msk [vmem:[%s1398_s16 + $0x8] sm:$0xff] %vm748_vm7, %v795_v56  ;;  %800 = vst.msk [vmem:[%s1398_s16 + $0x10] sm:$0xff] %vm748_vm7, %v796_v57 }
 0x322   : > { %v793_v59 = vpop.xlane.xlu0 %792 }
 0x323   : > { %v797_v60 = vadd.f32 %v793_v59, %v781_v58 }
 0x325   : > { %801 = vst.msk [vmem:[%s1398_s16 + $0x18] sm:$0xff] %vm748_vm7, %v797_v60 }
 0x326 PF: > { %p1083_p4 = scmp.ge.s32.totalorder %s1232_s10, 2  ;;  %s848_s15 = sand.u32 1, %s1212_s27  }
 0x327   : > { %s849_s11 = scalar_lea.sflag [#allocation3], %s848_s15 }
 0x328   : > { %p1080_p0 = pnand %p1083_p4, %p1334_p8 }
 0x32a   : > { %p1081_p1 = pneg %p1080_p0 }
 0x32c   : > { %1207 = dma.done.wait (%p1081_p1), %s849_s11, 256  }
 0x32d   : > { %1209 = vsyncadd (%p1081_p1), %s849_s11, 4294967040  ;;  %s22_s10 = sadd.s32 1, %s1232_s10   ;;  %s1524_s27 = smov %s1216_s28 }
 0x32e   : > { %p19_p2 = scmp.ge.s32.totalorder %s22_s10, 4   ;;  %s1525_s28 = smov %s1220_s29 }
 0x32f   : > { %s1526_s29 = smov %s1340_s18  ;;  %s1527_s30 = smov %s1228_s9 }
 0x330   : > { %s1528_s9 = smov %s1530_s13  ;;  %21 = sbr.rel (!%p19_p2) target bundleno = 6 (0x6), region = 116 }
 0x335   :  { %870 = vsyncpa [#allocation3], 1 }
 0x336   :  { %872 = vsyncpa [#allocation3 + $0x1], 1 }

</bundles_post_ra>
